<compile_context>
chip_gen: v6e
topology: v6e:2x2x1
jax: 0.10.0
libtpu: 0.0.40
codegen_flags: <defaults>
</compile_context>

<pallas_src>
import math
import functools

import jax
import jax.numpy as jnp
from jax import lax
from jax.experimental import pallas as pl
from jax.experimental.pallas import tpu as pltpu


def _lin_ln_relu_pe_kernel(x_ref, w_ref, b_ref, g_ref, beta_ref, pe_ref, o_ref,
                           *, eps, xscale, odim):
    # Per grid step (one time tile, all batch elements):
    #   x_ref  : (B, TM, idim)
    #   w_ref  : (idim, odim)        resident across the grid
    #   b_ref / g_ref / beta_ref : (1, odim) f32
    #   pe_ref : (TM, odim) f32      positional-encoding tile (shared across batch)
    #   o_ref  : (B, TM, odim)
    B, TM, idim = x_ref.shape

    # Fold batch into the MXU M dimension when the time tile is sublane-aligned
    # (always true on the large-T path).  Otherwise fall back to B small dots.
    sub = 8 if x_ref.dtype == jnp.float32 else 16
    if TM % sub == 0:
        x2 = x_ref[...].reshape(B * TM, idim)
        h = jnp.dot(x2, w_ref[...], preferred_element_type=jnp.float32)
        h = h.reshape(B, TM, odim)
    else:
        h = jnp.stack(
            [jnp.dot(x_ref[bi], w_ref[...], preferred_element_type=jnp.float32)
             for bi in range(B)], axis=0)

    h = h + b_ref[...].astype(jnp.float32)                    # (B, TM, odim)

    # Single-pass LayerNorm statistics over the (unpadded) feature axis.
    inv_odim = 1.0 / odim
    s1 = jnp.sum(h, axis=-1, keepdims=True) * inv_odim        # mean
    s2 = jnp.sum(h * h, axis=-1, keepdims=True) * inv_odim    # E[h^2]
    var = jnp.maximum(s2 - s1 * s1, 0.0)                      # clamp: cancellation safety
    hn = (h - s1) * lax.rsqrt(var + eps)                      # EUP rsqrt
    hn = hn * g_ref[...].astype(jnp.float32) + beta_ref[...].astype(jnp.float32)

    # ReLU, positional-encoding scale + add (PE broadcasts over batch).
    y = jnp.maximum(hn, 0.0) * xscale + pe_ref[...].astype(jnp.float32)
    o_ref[...] = y.astype(o_ref.dtype)


def _sinusoidal_pos_emb(offset, length, d_model, dtype=jnp.float32):
    # Standard WeNet PositionalEncoding table slice pe[offset : offset+length].
    pos = jnp.arange(offset, offset + length, dtype=jnp.float32)[:, None]   # (T, 1)
    div = jnp.exp(jnp.arange(0, d_model, 2, dtype=jnp.float32)
                  * (-math.log(10000.0) / d_model))                          # (d/2,)
    pe = jnp.zeros((length, d_model), dtype=jnp.float32)
    pe = pe.at[:, 0::2].set(jnp.sin(pos * div))
    pe = pe.at[:, 1::2].set(jnp.cos(pos * div))
    return pe.astype(dtype)


def linear_no_subsampling(x, x_mask, params, offset=0, time_tile=512):
    """x: (B, T, idim); x_mask: (B, 1, T) bool.  Returns (out, pos_emb, x_mask).

    For bandwidth-bound deployment pass x (and params['w']) as bfloat16: the
    matmul runs bf16 on the MXU with f32 accumulation, LayerNorm and the PE add
    stay f32, and the output is stored in x.dtype.
    """
    B, T, idim = x.shape
    w = params["w"].astype(x.dtype)
    b, gamma, beta = params["b"], params["gamma"], params["beta"]
    odim = w.shape[1]
    xscale = float(math.sqrt(odim))

    # PE stays f32 (both for the in-kernel add and the returned pos_emb).
    pos_emb = _sinusoidal_pos_emb(offset, T, odim, dtype=jnp.float32)   # (T, odim)

    x_bytes = jnp.dtype(x.dtype).itemsize
    align = 8 if x_bytes >= 4 else 16          # sublane packing for f32 / bf16

    # Time tile: full extent for short utterances (no partial blocks), otherwise
    # an aligned large tile (~512) so per-step overhead is amortized.
    if T <= time_tile:
        TM = T
    else:
        TM = max(align, (time_tile // align) * align)

    def footprint(tm):
        fp = 2 * B * tm * idim * x_bytes       # x tiles (double buffered)
        fp += 2 * B * tm * odim * x_bytes      # output tiles (double buffered)
        fp += 2 * tm * odim * 4                # PE tiles (f32, double buffered)
        fp += 2 * idim * odim * x_bytes        # weights
        fp += 2 * 3 * odim * 4                 # bias / gamma / beta
        fp += 4 * B * tm * odim * 4            # in-kernel f32 temporaries
        fp += B * tm * idim * x_bytes          # flatten copy of x
        return fp

    VMEM_BUDGET = 40 * 1024 * 1024             # leaves headroom on v7x (64 MiB phys)
    while TM > align and footprint(TM) > VMEM_BUDGET:
        TM = max(align, ((TM // 2) // align) * align)

    nT = pl.cdiv(T, TM)
    vmem_limit = int(min(max(int(1.25 * footprint(TM)) + (2 << 20), 32 << 20), 64 << 20))

    kernel = functools.partial(_lin_ln_relu_pe_kernel,
                               eps=1e-12, xscale=xscale, odim=odim)

    out = pl.pallas_call(
        kernel,
        out_shape=jax.ShapeDtypeStruct((B, T, odim), x.dtype),
        grid_spec=pltpu.PrefetchScalarGridSpec(
            num_scalar_prefetch=0,
            grid=(nT,),                                  # batch folded into the block
            in_specs=[
                pl.BlockSpec((B, TM, idim), lambda ti: (0, ti, 0)),   # x time tile
                pl.BlockSpec((idim, odim),  lambda ti: (0, 0)),       # W (resident)
                pl.BlockSpec((1, odim),     lambda ti: (0, 0)),       # bias
                pl.BlockSpec((1, odim),     lambda ti: (0, 0)),       # LN gamma
                pl.BlockSpec((1, odim),     lambda ti: (0, 0)),       # LN beta
                pl.BlockSpec((TM, odim),    lambda ti: (ti, 0)),      # PE tile (f32)
            ],
            out_specs=pl.BlockSpec((B, TM, odim), lambda ti: (0, ti, 0)),
        ),
        compiler_params=pltpu.CompilerParams(
            dimension_semantics=("parallel",),
            vmem_limit_bytes=vmem_limit),
    )(x, w, b, gamma, beta, pos_emb)

    # Module also returns dropout(pos_emb) (identity in eval) with leading batch dim 1.
    return out, pos_emb[None, :, :], x_mask


def init_params(key, idim, odim):
    kw, kb = jax.random.split(key)
    bound = 1.0 / math.sqrt(idim)
    # Stored already transposed to (idim, odim) so kernel does x @ W (+ b) == torch Linear.
    w = jax.random.uniform(kw, (idim, odim), jnp.float32, -bound, bound)
    b = jax.random.uniform(kb, (1, odim), jnp.float32, -bound, bound)
    gamma = jnp.ones((1, odim), jnp.float32)   # LayerNorm default init
    beta = jnp.zeros((1, odim), jnp.float32)
    return {"w": w, "b": b, "gamma": gamma, "beta": beta}


if __name__ == "__main__":
    B, T, idim, odim = 2, 8, 32, 32

    key = jax.random.PRNGKey(0)
    kx, kp = jax.random.split(key)
    x = jax.random.normal(kx, (B, T, idim), jnp.float32)
    x_mask = jnp.ones((B, 1, T), dtype=jnp.bool_)
    params = init_params(kp, idim, odim)

    out, pos_emb, mask_out = linear_no_subsampling(x, x_mask, params, offset=0)
    jax.block_until_ready((out, pos_emb, mask_out))

    # Pure-JAX reference of the same forward pass (Linear -> LN(1e-12) -> ReLU -> PE).
    h = x @ params["w"] + params["b"]
    mean = h.mean(-1, keepdims=True)
    var = ((h - mean) ** 2).mean(-1, keepdims=True)
    hn = (h - mean) / jnp.sqrt(var + 1e-12) * params["gamma"] + params["beta"]
    ref = jnp.maximum(hn, 0.0) * math.sqrt(odim) + _sinusoidal_pos_emb(0, T, odim)[None]
    err = float(jnp.abs(out - ref).max())
    assert jnp.allclose(out, ref, atol=1e-4, rtol=1e-4), err
    assert out.shape == (B, T, odim)
    assert pos_emb.shape == (1, T, odim)
    assert mask_out.shape == (B, 1, T)

    # TODO(synk): nn.Dropout is identity here (eval mode); no RNG dropout is applied.
    print("KERNEL_OK")
</pallas_src>

<mosaic_0001>
module attributes {stable_mosaic.version = 11 : i64} {
  func.func @_lin_ln_relu_pe_kernel(%arg0: i32, %arg1: memref<2x8x32xf32, #tpu.memory_space<vmem>>, %arg2: memref<32x32xf32, #tpu.memory_space<vmem>>, %arg3: memref<1x32xf32, #tpu.memory_space<vmem>>, %arg4: memref<1x32xf32, #tpu.memory_space<vmem>>, %arg5: memref<1x32xf32, #tpu.memory_space<vmem>>, %arg6: memref<8x32xf32, #tpu.memory_space<vmem>>, %arg7: memref<2x8x32xf32, #tpu.memory_space<vmem>>) attributes {dimension_semantics = [#tpu.dimension_semantics<parallel>], iteration_bounds = array<i64: 1>, scalar_prefetch = 0 : i64, scratch_operands = 0 : i64, tpu.core_type = #tpu.core_type<tc>, window_params = [{transform_indices = @transform_0, window_bounds = array<i64: 2, 8, 32>}, {pipeline_mode = #tpu.pipeline_mode<synchronous>, transform_indices = @transform_1, window_bounds = array<i64: 32, 32>}, {pipeline_mode = #tpu.pipeline_mode<synchronous>, transform_indices = @transform_2, window_bounds = array<i64: 1, 32>}, {pipeline_mode = #tpu.pipeline_mode<synchronous>, transform_indices = @transform_3, window_bounds = array<i64: 1, 32>}, {pipeline_mode = #tpu.pipeline_mode<synchronous>, transform_indices = @transform_4, window_bounds = array<i64: 1, 32>}, {transform_indices = @transform_5, window_bounds = array<i64: 8, 32>}, {transform_indices = @transform_6, window_bounds = array<i64: 2, 8, 32>}]} {
    %c0 = arith.constant 0 : index
    %c0_0 = arith.constant 0 : index
    %c0_1 = arith.constant 0 : index
    %0 = vector.load %arg1[%c0, %c0_0, %c0_1] : memref<2x8x32xf32, #tpu.memory_space<vmem>>, vector<2x8x32xf32>
    %1 = vector.shape_cast %0 : vector<2x8x32xf32> to vector<16x32xf32>
    %c0_2 = arith.constant 0 : index
    %c0_3 = arith.constant 0 : index
    %2 = vector.load %arg2[%c0_2, %c0_3] : memref<32x32xf32, #tpu.memory_space<vmem>>, vector<32x32xf32>
    %cst = arith.constant dense<0.000000e+00> : vector<16x32xf32>
    %3 = tpu.matmul %1, %2, %cst {dimension_numbers = #tpu.dot_dimension_numbers<[1], [0], [0], [1], [0, 0, 1, 1], [], []>} : vector<16x32xf32>, vector<32x32xf32>, vector<16x32xf32> -> vector<16x32xf32>
    %4 = vector.shape_cast %3 : vector<16x32xf32> to vector<2x8x32xf32>
    %c0_4 = arith.constant 0 : index
    %c0_5 = arith.constant 0 : index
    %5 = vector.load %arg3[%c0_4, %c0_5] : memref<1x32xf32, #tpu.memory_space<vmem>>, vector<1x32xf32>
    %6 = vector.shape_cast %5 : vector<1x32xf32> to vector<1x1x32xf32>
    %7 = vector.broadcast %6 : vector<1x1x32xf32> to vector<2x8x32xf32>
    %8 = arith.addf %4, %7 : vector<2x8x32xf32>
    %cst_6 = arith.constant dense<0.000000e+00> : vector<2x8xf32>
    %9 = vector.multi_reduction <add>, %8, %cst_6 [2] : vector<2x8x32xf32> to vector<2x8xf32>
    %10 = vector.shape_cast %9 : vector<2x8xf32> to vector<2x8x1xf32>
    %cst_7 = arith.constant 3.125000e-02 : f32
    %11 = vector.broadcast %cst_7 : f32 to vector<2x8x1xf32>
    %12 = arith.mulf %10, %11 : vector<2x8x1xf32>
    %13 = arith.mulf %8, %8 : vector<2x8x32xf32>
    %cst_8 = arith.constant dense<0.000000e+00> : vector<2x8xf32>
    %14 = vector.multi_reduction <add>, %13, %cst_8 [2] : vector<2x8x32xf32> to vector<2x8xf32>
    %15 = vector.shape_cast %14 : vector<2x8xf32> to vector<2x8x1xf32>
    %cst_9 = arith.constant 3.125000e-02 : f32
    %16 = vector.broadcast %cst_9 : f32 to vector<2x8x1xf32>
    %17 = arith.mulf %15, %16 : vector<2x8x1xf32>
    %18 = arith.mulf %12, %12 : vector<2x8x1xf32>
    %19 = arith.subf %17, %18 : vector<2x8x1xf32>
    %cst_10 = arith.constant 0.000000e+00 : f32
    %20 = vector.broadcast %cst_10 : f32 to vector<2x8x1xf32>
    %21 = arith.maximumf %19, %20 : vector<2x8x1xf32>
    %22 = vector.broadcast %12 : vector<2x8x1xf32> to vector<2x8x32xf32>
    %23 = arith.subf %8, %22 : vector<2x8x32xf32>
    %cst_11 = arith.constant 9.99999996E-13 : f32
    %24 = vector.broadcast %cst_11 : f32 to vector<2x8x1xf32>
    %25 = arith.addf %21, %24 : vector<2x8x1xf32>
    %26 = math.rsqrt %25 : vector<2x8x1xf32>
    %27 = vector.broadcast %26 : vector<2x8x1xf32> to vector<2x8x32xf32>
    %28 = arith.mulf %23, %27 : vector<2x8x32xf32>
    %c0_12 = arith.constant 0 : index
    %c0_13 = arith.constant 0 : index
    %29 = vector.load %arg4[%c0_12, %c0_13] : memref<1x32xf32, #tpu.memory_space<vmem>>, vector<1x32xf32>
    %30 = vector.shape_cast %29 : vector<1x32xf32> to vector<1x1x32xf32>
    %31 = vector.broadcast %30 : vector<1x1x32xf32> to vector<2x8x32xf32>
    %32 = arith.mulf %28, %31 : vector<2x8x32xf32>
    %c0_14 = arith.constant 0 : index
    %c0_15 = arith.constant 0 : index
    %33 = vector.load %arg5[%c0_14, %c0_15] : memref<1x32xf32, #tpu.memory_space<vmem>>, vector<1x32xf32>
    %34 = vector.shape_cast %33 : vector<1x32xf32> to vector<1x1x32xf32>
    %35 = vector.broadcast %34 : vector<1x1x32xf32> to vector<2x8x32xf32>
    %36 = arith.addf %32, %35 : vector<2x8x32xf32>
    %cst_16 = arith.constant 0.000000e+00 : f32
    %37 = vector.broadcast %cst_16 : f32 to vector<2x8x32xf32>
    %38 = arith.maximumf %36, %37 : vector<2x8x32xf32>
    %cst_17 = arith.constant 5.65685415 : f32
    %39 = vector.broadcast %cst_17 : f32 to vector<2x8x32xf32>
    %40 = arith.mulf %38, %39 : vector<2x8x32xf32>
    %c0_18 = arith.constant 0 : index
    %c0_19 = arith.constant 0 : index
    %41 = vector.load %arg6[%c0_18, %c0_19] : memref<8x32xf32, #tpu.memory_space<vmem>>, vector<8x32xf32>
    %42 = vector.shape_cast %41 : vector<8x32xf32> to vector<1x8x32xf32>
    %43 = vector.broadcast %42 : vector<1x8x32xf32> to vector<2x8x32xf32>
    %44 = arith.addf %40, %43 : vector<2x8x32xf32>
    %c0_20 = arith.constant 0 : index
    %c0_21 = arith.constant 0 : index
    %c0_22 = arith.constant 0 : index
    %45 = vector.load %arg7[%c0_20, %c0_21, %c0_22] : memref<2x8x32xf32, #tpu.memory_space<vmem>>, vector<2x8x32xf32>
    tpu.vector_store %arg7[%c0_20, %c0_21, %c0_22], %44 {strides = array<i32>} : memref<2x8x32xf32, #tpu.memory_space<vmem>>, vector<2x8x32xf32>,
    return
  }
  func.func @transform_0(%arg0: i32) -> (i32, i32, i32) {
    %c0_i32 = arith.constant 0 : i32
    %c0_i32_0 = arith.constant 0 : i32
    %c0_i32_1 = arith.constant 0 : i32
    return %c0_i32, %arg0, %c0_i32_0 : i32, i32, i32
  }
  func.func @transform_1(%arg0: i32) -> (i32, i32) {
    %c0_i32 = arith.constant 0 : i32
    %c0_i32_0 = arith.constant 0 : i32
    %c0_i32_1 = arith.constant 0 : i32
    return %c0_i32, %c0_i32_0 : i32, i32
  }
  func.func @transform_2(%arg0: i32) -> (i32, i32) {
    %c0_i32 = arith.constant 0 : i32
    %c0_i32_0 = arith.constant 0 : i32
    %c0_i32_1 = arith.constant 0 : i32
    return %c0_i32, %c0_i32_0 : i32, i32
  }
  func.func @transform_3(%arg0: i32) -> (i32, i32) {
    %c0_i32 = arith.constant 0 : i32
    %c0_i32_0 = arith.constant 0 : i32
    %c0_i32_1 = arith.constant 0 : i32
    return %c0_i32, %c0_i32_0 : i32, i32
  }
  func.func @transform_4(%arg0: i32) -> (i32, i32) {
    %c0_i32 = arith.constant 0 : i32
    %c0_i32_0 = arith.constant 0 : i32
    %c0_i32_1 = arith.constant 0 : i32
    return %c0_i32, %c0_i32_0 : i32, i32
  }
  func.func @transform_5(%arg0: i32) -> (i32, i32) {
    %c0_i32 = arith.constant 0 : i32
    %c0_i32_0 = arith.constant 0 : i32
    return %arg0, %c0_i32 : i32, i32
  }
  func.func @transform_6(%arg0: i32) -> (i32, i32, i32) {
    %c0_i32 = arith.constant 0 : i32
    %c0_i32_0 = arith.constant 0 : i32
    %c0_i32_1 = arith.constant 0 : i32
    return %c0_i32, %arg0, %c0_i32_0 : i32, i32, i32
  }
}

</mosaic_0001>

<bundles_post_ra>
// kernel: tpu_custom_call.1
= control target key start
LH: loop header
LB: loop body
LE: loop exit
PB: predicated region body
PF: predicated region fallthrough
CT: control target
= control target key end

     0   :  { %11 = vsyncpa [#allocation3], 0  ;;  %s471_s0 = inlined_call_operand.hbm [shape: f32[2,8,32], index: 0, kind: input, shape index: {}]   ;;  %s472_s1 = inlined_call_operand.hbm [shape: f32[32,32], index: 1, kind: input, shape index: {}]   ;;  %s473_s2 = inlined_call_operand.vmem [shape: f32[1,32], index: 2, kind: input, shape index: {}]   ;;  %s474_s3 = inlined_call_operand.hbm [shape: f32[1,32], index: 3, kind: input, shape index: {}]   ;;  %s475_s4 = inlined_call_operand.hbm [shape: f32[1,32], index: 4, kind: input, shape index: {}]   ;;  %s476_s5 = inlined_call_operand.vmem [shape: f32[8,32], index: 5, kind: input, shape index: {}]   ;;  %s477_s6 = inlined_call_operand.hbm [shape: f32[2,8,32], index: 6, kind: output, shape index: {}]  }
   0x1   :  { %12 = vsyncpa [#allocation6], 0 }
   0x2   :  { %13 = vsyncpa [#allocation9], 0 }
   0x3   :  { %14 = vsyncpa [#allocation4], 0  ;;  %s391_s21 = smov [#allocation5]   ;;  %s392_s23 = smov [#allocation2]  }
   0x4   :  { %s32_s22 = sshll.u32 %s391_s21, 4  ;;  %s20_s24 = sshll.u32 %s392_s23, 4  ;;  %s33_s22 = int_to_ptr.vmem [resolvable:$true] %s32_s22  ;;  %s21_s24 = int_to_ptr.vmem [resolvable:$true] %s20_s24 }
   0x5   :  { %s291_s25 = scalar_lea.vmem %s33_s22, 512  ;;  %p296_p1 = scmp.lt.s32.totalorder %s33_s22, %s33_s22 }
   0x6   :  { %p292_p0 = scmp.ne.s32.totalorder %s33_s22, %s291_s25  ;;  %p297_p2 = scmp.lt.s32.totalorder %s291_s25, %s291_s25 }
   0x8   :  { %p298_p3 = por %p297_p2, %p296_p1 }
   0xa   :  { %p299_p4 = pnand %p298_p3, %p292_p0 }
   0xc   :  { %302 = shalt.err (!%p299_p4)
}
   0xd   :  { %s393_s26 = smov 128   ;;  %s394_s27 = smov 8  }
   0xe   :  { %38 = dma.hbm_to_vmem [thread:$0]  %s472_s1, 512, %s33_s22, [#allocation6], %s393_s26, %s393_s26, %s394_s27  }
   0xf   :  { %s311_s30 = scalar_lea.vmem %s21_s24, 256  ;;  %p316_p6 = scmp.lt.s32.totalorder %s21_s24, %s21_s24 }
  0x10   :  { %p312_p5 = scmp.ne.s32.totalorder %s21_s24, %s311_s30  ;;  %p317_p7 = scmp.lt.s32.totalorder %s311_s30, %s311_s30 }
  0x12   :  { %p318_p8 = por %p317_p7, %p316_p6 }
  0x14   :  { %p319_p9 = pnand %p318_p8, %p312_p5 }
  0x16   :  { %322 = shalt.err (!%p319_p9)
}
  0x17   :  { %26 = dma.hbm_to_vmem [thread:$0]  %s471_s0, 256, %s21_s24, [#allocation3], %s393_s26, %s393_s26, %s394_s27  }
  0x18   :  { %s395_s9 = smov [#allocation7]   ;;  %s396_s11 = smov [#allocation8]  }
  0x19   :  { %s47_s10 = sshll.u32 %s395_s9, 4  ;;  %s57_s12 = sshll.u32 %s396_s11, 4  ;;  %s48_s10 = int_to_ptr.vmem [resolvable:$true] %s47_s10  ;;  %s58_s12 = int_to_ptr.vmem [resolvable:$true] %s57_s12 }
  0x1a   :  { %s331_s1 = scalar_lea.vmem %s48_s10, 16  ;;  %s335_s13 = scalar_lea.vmem %s48_s10, 32 }
  0x1b   :  { %p332_p10 = scmp.ne.s32.totalorder %s48_s10, %s331_s1  ;;  %p336_p11 = scmp.lt.s32.totalorder %s48_s10, %s48_s10 }
  0x1c   :  { %p337_p12 = scmp.lt.s32.totalorder %s335_s13, %s331_s1 }
  0x1e   :  { %p338_p13 = por %p337_p12, %p336_p11 }
  0x20   :  { %p339_p0 = pnand %p338_p13, %p332_p10 }
  0x22   :  { %342 = shalt.err (!%p339_p0)
}
  0x23   :  { %50 = dma.hbm_to_vmem [thread:$0]  %s474_s3, 16, %s48_s10, [#allocation6]  }
  0x24   :  { %s351_s16 = scalar_lea.vmem %s58_s12, 16  ;;  %s355_s0 = scalar_lea.vmem %s58_s12, 32 }
  0x25   :  { %p352_p1 = scmp.ne.s32.totalorder %s58_s12, %s351_s16  ;;  %p356_p2 = scmp.lt.s32.totalorder %s58_s12, %s58_s12 }
  0x26   :  { %p357_p3 = scmp.lt.s32.totalorder %s355_s0, %s351_s16 }
  0x28   :  { %p358_p4 = por %p357_p3, %p356_p2 }
  0x2a   :  { %p359_p5 = pnand %p358_p4, %p352_p1 }
  0x2c   :  { %362 = shalt.err (!%p359_p5)
}
  0x2d   :  { %60 = dma.hbm_to_vmem [thread:$0]  %s475_s4, 16, %s58_s12, [#allocation9]  }
  0x2e   :  { %383 = dma.done.wait [#allocation3], 256  }
  0x2f   :  { %384 = vsyncadd [#allocation3], 4294967040 }
  0x30   :  { %385 = dma.done.wait [#allocation6], 528  }
  0x31   :  { %386 = vsyncadd [#allocation6], 4294966768 }
  0x32   :  { %387 = dma.done.wait [#allocation9], 16  }
  0x33   :  { %388 = vsyncadd [#allocation9], 4294967280  ;;  %vm81_vm0 = vcmask 261120   ;;  %v80_v0 = vld [vmem:[#allocation5 + $0x18] sm:$0xff]  ;;  %v79_v1 = vld [vmem:[#allocation5 + $0x10] sm:$0xff]  ;;  %s397_s20 = smov [#allocation10]  }
  0x34   :  { %261 = vmatprep.subr.mxu0 %v80_v0  ;;  %v75_v2 = vld [vmem:[#allocation2] sm:$0xff]  ;;  %v78_v3 = vld [vmem:[#allocation5 + $0x8] sm:$0xff]  ;;  %v77_v4 = vld [vmem:[#allocation5] sm:$0xff]  ;;  %s236_s21 = sshll.u32 %s397_s20, 4  ;;  %s237_s21 = int_to_ptr.vmem [resolvable:$true] %s236_s21 }
  0x35   :  { %262 = vmatpush3.msra.mxu0 %v80_v0  ;;  %269 = vmatprep.mubr.msk.f32.mxu0 %vm81_vm0, %v75_v2  ;;  %v76_v5 = vld [vmem:[#allocation2 + $0x8] sm:$0xff]  ;;  %v252_v7 = vld [vmem:[%s473_s2] ss:$0 sm:$0xff]  ;;  %v253_v35 = vld [vmem:[#allocation7] ss:$0 sm:$0xff]  ;;  %s363_s22 = scalar_lea.vmem %s237_s21, 256  ;;  %p368_p7 = scmp.lt.s32.totalorder %s237_s21, %s237_s21 }
  0x36   :  { %263 = vmatprep.subr.mxu0 %v79_v1  ;;  %v254_v37 = vld [vmem:[#allocation8] ss:$0 sm:$0xff]  ;;  %v226_v45 = vld [vmem:[%s476_s5] sm:$0xff]  ;;  %p364_p6 = scmp.ne.s32.totalorder %s237_s21, %s363_s22  ;;  %p369_p8 = scmp.lt.s32.totalorder %s363_s22, %s363_s22 }
  0x37   :  { %264 = vmatpush3.msra.mxu0 %v79_v1 }
  0x38   :  { %265 = vmatprep.subr.mxu0 %v78_v3  ;;  %p370_p9 = por %p369_p8, %p368_p7 }
  0x39   :  { %266 = vmatpush3.msra.mxu0 %v78_v3 }
  0x3a   :  { %267 = vmatprep.subr.mxu0 %v77_v4  ;;  %p371_p10 = pnand %p370_p9, %p364_p6 }
  0x3b   :  { %268 = vmatpush3.msra.mxu0 %v77_v4 }
  0x3c   :  { %270 = vmatmul.mubr.msk.f32.vlgmr.msra.gmra.mxu0 %vm81_vm0, %v76_v5 }
  0xfc   :  { %v271_v6 = vpop.f32.mrf.mxu0 }
  0xfd   :  { %v171_v9 = vadd.f32 %v271_v6, %v252_v7 }
  0xfe   :  { %v154_v8 = vpop.f32.mrf.mxu0 }
  0xff   :  { %v170_v10 = vadd.f32 %v252_v7, %v154_v8  ;;  %v181_v14 = vmul.f32 %v171_v9, %v171_v9  ;;  %v175_v15 = vsel %vm81_vm0, %v171_v9, 0.0 }
 0x101   :  { %v172_v11 = vsel %vm81_vm0, %v170_v10, 0.0  ;;  %v180_v12 = vmul.f32 %v170_v10, %v170_v10  ;;  %v185_v16 = vsel %vm81_vm0, %v181_v14, 0.0 }
 0x102   :  { %173 = vadd.xlane.f32.xlu0 %v172_v11 }
 0x103   :  { %v182_v13 = vsel %vm81_vm0, %v180_v12, 0.0 }
 0x104   :  { %183 = vadd.xlane.f32.xlu1 %v182_v13 }
 0x106   :  { %176 = vadd.xlane.f32.xlu0 %v175_v15 }
 0x108   :  { %186 = vadd.xlane.f32.xlu1 %v185_v16 }
 0x18b   :  { %v174_v17 = vpop.xlane.xlu0 %173 }
 0x18c   :  { %v178_v18 = vmul.f32 0.03125, %v174_v17 }
 0x18d   :  { %v184_v19 = vpop.xlane.xlu1 %183 }
 0x18e   :  { %v190_v20 = vmul.f32 %v178_v18, %v178_v18  ;;  %v188_v21 = vmul.f32 0.03125, %v184_v19  ;;  %v196_v33 = vsub.f32 %v170_v10, %v178_v18 }
 0x18f   :  { %v177_v22 = vpop.xlane.xlu0 %176 }
 0x190   :  { %v192_v23 = vsub.f32 %v188_v21, %v190_v20  ;;  %v179_v24 = vmul.f32 0.03125, %v177_v22 }
 0x191   :  { %v187_v25 = vpop.xlane.xlu1 %186 }
 0x192   :  { %v194_v26 = vmax.f32 %v192_v23, 0.0  ;;  %v191_v27 = vmul.f32 %v179_v24, %v179_v24  ;;  %v189_v28 = vmul.f32 0.03125, %v187_v25  ;;  %v197_v38 = vsub.f32 %v171_v9, %v179_v24 }
 0x194   :  { %v198_v29 = vadd.f32 1e-12, %v194_v26  ;;  %v193_v30 = vsub.f32 %v189_v28, %v191_v27 }
 0x196   :  { %279 = vrsqrt.f32 %v198_v29  ;;  %v195_v31 = vmax.f32 %v193_v30, 0.0 }
 0x198   :  { %v199_v32 = vadd.f32 1e-12, %v195_v31 }
 0x19a   :  { %281 = vrsqrt.f32 %v199_v32 }
 0x1a3   :  { %v280_v34 = vpop.eup %279 }
 0x1a4   :  { %v202_v36 = vmul.f32 %v280_v34, %v196_v33 }
 0x1a6   :  { %v211_v39 = vmul.f32 %v253_v35, %v202_v36 }
 0x1a7   :  { %v282_v40 = vpop.eup %281 }
 0x1a8   :  { %v203_v41 = vmul.f32 %v282_v40, %v197_v38  ;;  %v220_v42 = vadd.f32 %v254_v37, %v211_v39 }
 0x1aa   :  { %v212_v43 = vmul.f32 %v253_v35, %v203_v41  ;;  %v222_v44 = vmax.f32 %v220_v42, 0.0 }
 0x1ac   :  { %v221_v46 = vadd.f32 %v254_v37, %v212_v43  ;;  %v224_v47 = vmul.f32 5.656854, %v222_v44 }
 0x1ae   :  { %v223_v48 = vmax.f32 %v221_v46, 0.0  ;;  %v227_v49 = vadd.f32 %v226_v45, %v224_v47 }
 0x1b0   :  { %v225_v50 = vmul.f32 5.656854, %v223_v48  ;;  %229 = vst.msk [vmem:[#allocation10] sm:$0xff] %vm81_vm0, %v227_v49 }
 0x1b2   :  { %v228_v51 = vadd.f32 %v226_v45, %v225_v50 }
 0x1b4   :  { %230 = vst.msk [vmem:[#allocation10 + $0x8] sm:$0xff] %vm81_vm0, %v228_v51 }
 0x1b5   :  { %374 = shalt.err (!%p371_p10)
}
 0x1b6   :  { %242 = dma.vmem_to_hbm [thread:$0]  %s237_s21, 256, %s477_s6, [#allocation4], %s393_s26, %s393_s26, %s394_s27  }
 0x1b7   :  { %389 = dma.done.wait [#allocation4], 256  }
 0x1b8   :  { %390 = vsyncadd [#allocation4], 4294967040 }
 0x1b9   :  { %246 = vsyncpa [#allocation3], 1 }
 0x1ba   :  { %247 = vsyncpa [#allocation6], 1 }
 0x1bb   :  { %248 = vsyncpa [#allocation9], 1 }
 0x1bc   :  { %249 = vsyncpa [#allocation4], 1 }

</bundles_post_ra>
